<compile_context>
chip_gen: v6e
topology: v6e:2x2x1
jax: 0.10.0
libtpu: 0.0.40
codegen_flags: <defaults>
</compile_context>

<pallas_src>
import functools

import jax
import jax.numpy as jnp
from jax import lax
from jax.experimental import pallas as pl
from jax.experimental.pallas import tpu as pltpu


def _self_attn_kernel(xf_ref, xq_ref, wq_ref, wk_ref, wv_ref, wo_ref, bo_ref,
                      o_ref, k_scr, v_scr, *, heads, dim_head):
    # xf_ref : (1, N, D)   full sequence for this batch element (K/V source)
    # xq_ref : (1, tq, D)  query tile
    # wq/wk/wv_ref : (D, inner) bf16, pre-transposed (scale folded into wq)
    # wo_ref : (inner, D) bf16, pre-transposed to_out weight
    # bo_ref : (1, D) f32  to_out bias
    # o_ref  : (1, tq, D)
    # k_scr/v_scr : (N, inner) bf16 VMEM scratch, persistent across q tiles
    qi = pl.program_id(1)

    # Project K and V once per batch element; scratch persists across the
    # query-tile axis (marked "arbitrary").
    @pl.when(qi == 0)
    def _():
        xf = xf_ref[0].astype(jnp.bfloat16)                          # (N, D)
        k_scr[...] = jnp.dot(
            xf, wk_ref[...],
            preferred_element_type=jnp.float32).astype(jnp.bfloat16)
        v_scr[...] = jnp.dot(
            xf, wv_ref[...],
            preferred_element_type=jnp.float32).astype(jnp.bfloat16)

    xq = xq_ref[0].astype(jnp.bfloat16)                              # (tq, D)
    # one fused projection for all heads; 1/sqrt(dh) already baked into wq
    q = jnp.dot(xq, wq_ref[...], preferred_element_type=jnp.float32)  # (tq, inner)

    k = k_scr[...]                                                    # (N, inner)
    v = v_scr[...]

    dh = dim_head
    head_outs = []
    for h in range(heads):                    # static unroll over heads
        sl = slice(h * dh, (h + 1) * dh)
        q_h = q[:, sl].astype(jnp.bfloat16)   # (tq, dh)
        k_h = k[:, sl]                        # (N, dh)
        v_h = v[:, sl]                        # (N, dh)

        # scores = q_h @ k_h^T without materializing a transpose
        s = lax.dot_general(q_h, k_h, (((1,), (1,)), ((), ())),
                            preferred_element_type=jnp.float32)       # (tq, N)

        # numerically-stable softmax in f32
        m = jnp.max(s, axis=-1, keepdims=True)
        p = jnp.exp(s - m)
        denom = jnp.sum(p, axis=-1, keepdims=True)
        attn = p * pl.reciprocal(denom, approx=True)

        head_outs.append(jnp.dot(attn.astype(jnp.bfloat16), v_h,
                                 preferred_element_type=jnp.float32))  # (tq, dh)

    out = jnp.concatenate(head_outs, axis=-1)                          # (tq, inner)
    y = jnp.dot(out.astype(jnp.bfloat16), wo_ref[...],
                preferred_element_type=jnp.float32) + bo_ref[...]      # (tq, D)
    o_ref[...] = y[None, :, :].astype(o_ref.dtype)


def self_attention_pallas(x, w_qkv, w_out, b_out, *, heads, dim_head,
                          q_block=None):
    """x: (B, N, D) f32.  w_qkv: (3*H*dh, D).  w_out: (D, H*dh).  b_out: (D,)."""
    B, N, D = x.shape
    H, dh = heads, dim_head
    inner = H * dh
    scale = float(dh) ** -0.5

    if q_block is None:
        q_block = N if N <= 256 else 256
    assert N % q_block == 0, "N must be divisible by q_block"
    assert q_block == N or q_block % 8 == 0, "q_block must be a multiple of 8"
    nq = N // q_block

    # Weight prep (plain JAX glue, done once): split, transpose to (in, out),
    # fold the attention scale into Wq, cast matmul operands to bf16.
    wq, wk, wv = jnp.split(w_qkv, 3, axis=0)            # each (inner, D)
    wq_t = (wq * scale).T.astype(jnp.bfloat16)          # (D, inner)
    wk_t = wk.T.astype(jnp.bfloat16)                    # (D, inner)
    wv_t = wv.T.astype(jnp.bfloat16)                    # (D, inner)
    wo_t = w_out.T.astype(jnp.bfloat16)                 # (inner, D)
    bo = b_out.reshape(1, D).astype(jnp.float32)

    kernel = functools.partial(_self_attn_kernel, heads=H, dim_head=dh)

    out = pl.pallas_call(
        kernel,
        out_shape=jax.ShapeDtypeStruct((B, N, D), x.dtype),
        grid=(B, nq),
        in_specs=[
            pl.BlockSpec((1, N, D), lambda b, qi: (b, 0, 0)),        # x (full, K/V)
            pl.BlockSpec((1, q_block, D), lambda b, qi: (b, qi, 0)),  # x (q tile)
            pl.BlockSpec((D, inner), lambda b, qi: (0, 0)),           # wq_t
            pl.BlockSpec((D, inner), lambda b, qi: (0, 0)),           # wk_t
            pl.BlockSpec((D, inner), lambda b, qi: (0, 0)),           # wv_t
            pl.BlockSpec((inner, D), lambda b, qi: (0, 0)),           # wo_t
            pl.BlockSpec((1, D), lambda b, qi: (0, 0)),               # bias
        ],
        out_specs=pl.BlockSpec((1, q_block, D), lambda b, qi: (b, qi, 0)),
        scratch_shapes=[
            pltpu.VMEM((N, inner), jnp.bfloat16),   # K scratch
            pltpu.VMEM((N, inner), jnp.bfloat16),   # V scratch
        ],
        compiler_params=pltpu.CompilerParams(
            dimension_semantics=("parallel", "arbitrary"),
            vmem_limit_bytes=32 * 1024 * 1024,
        ),
    )(x, x, wq_t, wk_t, wv_t, wo_t, bo)
    return out


def self_attention_ref(x, w_qkv, w_out, b_out, *, heads, dim_head):
    """Pure-JAX f32 reference mirroring the PyTorch forward (dropout=0)."""
    B, N, D = x.shape
    H, dh = heads, dim_head
    qkv = x @ w_qkv.T                                   # (B, N, 3*H*dh)
    q, k, v = jnp.split(qkv, 3, axis=-1)

    def to_heads(t):
        return jnp.transpose(t.reshape(B, N, H, dh), (0, 2, 1, 3))   # (B,H,N,dh)

    q, k, v = map(to_heads, (q, k, v))
    dots = jnp.einsum("bhnd,bhmd->bhnm", q, k) * (dh ** -0.5)
    attn = jax.nn.softmax(dots, axis=-1)
    out = jnp.einsum("bhnm,bhmd->bhnd", attn, v)
    out = jnp.transpose(out, (0, 2, 1, 3)).reshape(B, N, H * dh)
    return out @ w_out.T + b_out


if __name__ == "__main__":
    # Small deterministic config: dim=32, heads=2, dim_head=16 -> inner_dim=32.
    # N=16 with q_block=8 exercises the multi-query-tile path (grid = (2, 2)).
    B, N, D = 2, 16, 32
    heads, dim_head = 2, 16
    inner = heads * dim_head

    key = jax.random.PRNGKey(0)
    kx, k1, k2, k3 = jax.random.split(key, 4)

    x = jax.random.normal(kx, (B, N, D), dtype=jnp.float32)

    # nn.Linear-style deterministic init: U(-1/sqrt(fan_in), 1/sqrt(fan_in))
    lim_qkv = 1.0 / (D ** 0.5)
    lim_out = 1.0 / (inner ** 0.5)
    w_qkv = jax.random.uniform(k1, (3 * inner, D), jnp.float32,
                               -lim_qkv, lim_qkv)            # to_qkv.weight
    w_out = jax.random.uniform(k2, (D, inner), jnp.float32,
                               -lim_out, lim_out)             # to_out[0].weight
    b_out = jax.random.uniform(k3, (D,), jnp.float32,
                               -lim_out, lim_out)             # to_out[0].bias

    y = self_attention_pallas(x, w_qkv, w_out, b_out,
                              heads=heads, dim_head=dim_head, q_block=8)
    jax.block_until_ready(y)

    y_ref = self_attention_ref(x, w_qkv, w_out, b_out,
                               heads=heads, dim_head=dim_head)
    # bf16 matmul operands with f32 accumulation -> relaxed tolerance
    assert jnp.allclose(y, y_ref, atol=3e-2, rtol=3e-2), "mismatch vs reference"

    print("KERNEL_OK")
</pallas_src>

<mosaic_0001>
module attributes {stable_mosaic.version = 11 : i64} {
  func.func @_self_attn_kernel(%arg0: i32, %arg1: i32, %arg2: memref<1x16x32xf32, #tpu.memory_space<vmem>>, %arg3: memref<1x8x32xf32, #tpu.memory_space<vmem>>, %arg4: memref<32x32xbf16, #tpu.memory_space<vmem>>, %arg5: memref<32x32xbf16, #tpu.memory_space<vmem>>, %arg6: memref<32x32xbf16, #tpu.memory_space<vmem>>, %arg7: memref<32x32xbf16, #tpu.memory_space<vmem>>, %arg8: memref<1x32xf32, #tpu.memory_space<vmem>>, %arg9: memref<1x8x32xf32, #tpu.memory_space<vmem>>, %arg10: memref<16x32xbf16, #tpu.memory_space<vmem>>, %arg11: memref<16x32xbf16, #tpu.memory_space<vmem>>) attributes {dimension_semantics = [#tpu.dimension_semantics<parallel>, #tpu.dimension_semantics<arbitrary>], iteration_bounds = array<i64: 2, 2>, scalar_prefetch = 0 : i64, scratch_operands = 2 : i64, tpu.core_type = #tpu.core_type<tc>, window_params = [{transform_indices = @transform_0, window_bounds = array<i64: 1, 16, 32>}, {transform_indices = @transform_1, window_bounds = array<i64: 1, 8, 32>}, {pipeline_mode = #tpu.pipeline_mode<synchronous>, transform_indices = @transform_2, window_bounds = array<i64: 32, 32>}, {pipeline_mode = #tpu.pipeline_mode<synchronous>, transform_indices = @transform_3, window_bounds = array<i64: 32, 32>}, {pipeline_mode = #tpu.pipeline_mode<synchronous>, transform_indices = @transform_4, window_bounds = array<i64: 32, 32>}, {pipeline_mode = #tpu.pipeline_mode<synchronous>, transform_indices = @transform_5, window_bounds = array<i64: 32, 32>}, {pipeline_mode = #tpu.pipeline_mode<synchronous>, transform_indices = @transform_6, window_bounds = array<i64: 1, 32>}, {transform_indices = @transform_7, window_bounds = array<i64: 1, 8, 32>}]} {
    %c0_i32 = arith.constant 0 : i32
    %0 = arith.cmpi eq, %arg1, %c0_i32 : i32
    %1 = arith.extui %0 : i1 to i32
    %c0_i32_0 = arith.constant 0 : i32
    %2 = arith.cmpi ne, %1, %c0_i32_0 : i32
    scf.if %2 {
      %c0_25 = arith.constant 0 : index
      %c0_26 = arith.constant 0 : index
      %c0_27 = arith.constant 0 : index
      %53 = vector.load %arg2[%c0_25, %c0_26, %c0_27] : memref<1x16x32xf32, #tpu.memory_space<vmem>>, vector<1x16x32xf32>
      %54 = vector.shape_cast %53 : vector<1x16x32xf32> to vector<16x32xf32>
      %55 = arith.truncf %54 : vector<16x32xf32> to vector<16x32xbf16>
      %c0_28 = arith.constant 0 : index
      %c0_29 = arith.constant 0 : index
      %56 = vector.load %arg5[%c0_28, %c0_29] : memref<32x32xbf16, #tpu.memory_space<vmem>>, vector<32x32xbf16>
      %cst_30 = arith.constant dense<0.000000e+00> : vector<16x32xf32>
      %57 = tpu.matmul %55, %56, %cst_30 {dimension_numbers = #tpu.dot_dimension_numbers<[1], [0], [0], [1], [0, 0, 1, 1], [], []>} : vector<16x32xbf16>, vector<32x32xbf16>, vector<16x32xf32> -> vector<16x32xf32>
      %58 = arith.truncf %57 : vector<16x32xf32> to vector<16x32xbf16>
      %c0_31 = arith.constant 0 : index
      %c0_32 = arith.constant 0 : index
      %59 = vector.load %arg10[%c0_31, %c0_32] : memref<16x32xbf16, #tpu.memory_space<vmem>>, vector<16x32xbf16>
      tpu.vector_store %arg10[%c0_31, %c0_32], %58 {strides = array<i32>} : memref<16x32xbf16, #tpu.memory_space<vmem>>, vector<16x32xbf16>,
      %c0_33 = arith.constant 0 : index
      %c0_34 = arith.constant 0 : index
      %60 = vector.load %arg6[%c0_33, %c0_34] : memref<32x32xbf16, #tpu.memory_space<vmem>>, vector<32x32xbf16>
      %cst_35 = arith.constant dense<0.000000e+00> : vector<16x32xf32>
      %61 = tpu.matmul %55, %60, %cst_35 {dimension_numbers = #tpu.dot_dimension_numbers<[1], [0], [0], [1], [0, 0, 1, 1], [], []>} : vector<16x32xbf16>, vector<32x32xbf16>, vector<16x32xf32> -> vector<16x32xf32>
      %62 = arith.truncf %61 : vector<16x32xf32> to vector<16x32xbf16>
      %c0_36 = arith.constant 0 : index
      %c0_37 = arith.constant 0 : index
      %63 = vector.load %arg11[%c0_36, %c0_37] : memref<16x32xbf16, #tpu.memory_space<vmem>>, vector<16x32xbf16>
      tpu.vector_store %arg11[%c0_36, %c0_37], %62 {strides = array<i32>} : memref<16x32xbf16, #tpu.memory_space<vmem>>, vector<16x32xbf16>,
    } else {
    }
    %c0 = arith.constant 0 : index
    %c0_1 = arith.constant 0 : index
    %c0_2 = arith.constant 0 : index
    %3 = vector.load %arg3[%c0, %c0_1, %c0_2] : memref<1x8x32xf32, #tpu.memory_space<vmem>>, vector<1x8x32xf32>
    %4 = vector.shape_cast %3 : vector<1x8x32xf32> to vector<8x32xf32>
    %5 = arith.truncf %4 : vector<8x32xf32> to vector<8x32xbf16>
    %c0_3 = arith.constant 0 : index
    %c0_4 = arith.constant 0 : index
    %6 = vector.load %arg4[%c0_3, %c0_4] : memref<32x32xbf16, #tpu.memory_space<vmem>>, vector<32x32xbf16>
    %cst = arith.constant dense<0.000000e+00> : vector<8x32xf32>
    %7 = tpu.matmul %5, %6, %cst {dimension_numbers = #tpu.dot_dimension_numbers<[1], [0], [0], [1], [0, 0, 1, 1], [], []>} : vector<8x32xbf16>, vector<32x32xbf16>, vector<8x32xf32> -> vector<8x32xf32>
    %c0_5 = arith.constant 0 : index
    %c0_6 = arith.constant 0 : index
    %8 = vector.load %arg10[%c0_5, %c0_6] : memref<16x32xbf16, #tpu.memory_space<vmem>>, vector<16x32xbf16>
    %c0_7 = arith.constant 0 : index
    %c0_8 = arith.constant 0 : index
    %9 = vector.load %arg11[%c0_7, %c0_8] : memref<16x32xbf16, #tpu.memory_space<vmem>>, vector<16x32xbf16>
    %10 = vector.extract_strided_slice %7 {offsets = [0, 0], sizes = [8, 16], strides = [1, 1]} : vector<8x32xf32> to vector<8x16xf32>
    %11 = arith.truncf %10 : vector<8x16xf32> to vector<8x16xbf16>
    %12 = vector.extract_strided_slice %8 {offsets = [0, 0], sizes = [16, 16], strides = [1, 1]} : vector<16x32xbf16> to vector<16x16xbf16>
    %13 = vector.extract_strided_slice %9 {offsets = [0, 0], sizes = [16, 16], strides = [1, 1]} : vector<16x32xbf16> to vector<16x16xbf16>
    %cst_9 = arith.constant dense<0.000000e+00> : vector<8x16xf32>
    %14 = tpu.matmul %11, %12, %cst_9 {dimension_numbers = #tpu.dot_dimension_numbers<[1], [1], [0], [0], [0, 0, 1, 0], [], []>} : vector<8x16xbf16>, vector<16x16xbf16>, vector<8x16xf32> -> vector<8x16xf32>
    %cst_10 = arith.constant dense<0xFF800000> : vector<8xf32>
    %15 = vector.multi_reduction <maximumf>, %14, %cst_10 [1] : vector<8x16xf32> to vector<8xf32>
    %16 = vector.shape_cast %15 : vector<8xf32> to vector<8x1xf32>
    %17 = vector.broadcast %16 : vector<8x1xf32> to vector<8x16xf32>
    %18 = arith.subf %14, %17 : vector<8x16xf32>
    %19 = math.exp %18 : vector<8x16xf32>
    %cst_11 = arith.constant dense<0.000000e+00> : vector<8xf32>
    %20 = vector.multi_reduction <add>, %19, %cst_11 [1] : vector<8x16xf32> to vector<8xf32>
    %21 = vector.shape_cast %20 : vector<8xf32> to vector<8x1xf32>
    %22 = tpu.reciprocal %21 {approx = true} : vector<8x1xf32> -> vector<8x1xf32>
    %23 = vector.broadcast %22 : vector<8x1xf32> to vector<8x16xf32>
    %24 = arith.mulf %19, %23 : vector<8x16xf32>
    %25 = arith.truncf %24 : vector<8x16xf32> to vector<8x16xbf16>
    %cst_12 = arith.constant dense<0.000000e+00> : vector<8x16xf32>
    %26 = tpu.matmul %25, %13, %cst_12 {dimension_numbers = #tpu.dot_dimension_numbers<[1], [0], [0], [1], [0, 0, 1, 1], [], []>} : vector<8x16xbf16>, vector<16x16xbf16>, vector<8x16xf32> -> vector<8x16xf32>
    %27 = vector.extract_strided_slice %7 {offsets = [0, 16], sizes = [8, 16], strides = [1, 1]} : vector<8x32xf32> to vector<8x16xf32>
    %28 = arith.truncf %27 : vector<8x16xf32> to vector<8x16xbf16>
    %29 = vector.extract_strided_slice %8 {offsets = [0, 16], sizes = [16, 16], strides = [1, 1]} : vector<16x32xbf16> to vector<16x16xbf16>
    %30 = vector.extract_strided_slice %9 {offsets = [0, 16], sizes = [16, 16], strides = [1, 1]} : vector<16x32xbf16> to vector<16x16xbf16>
    %cst_13 = arith.constant dense<0.000000e+00> : vector<8x16xf32>
    %31 = tpu.matmul %28, %29, %cst_13 {dimension_numbers = #tpu.dot_dimension_numbers<[1], [1], [0], [0], [0, 0, 1, 0], [], []>} : vector<8x16xbf16>, vector<16x16xbf16>, vector<8x16xf32> -> vector<8x16xf32>
    %cst_14 = arith.constant dense<0xFF800000> : vector<8xf32>
    %32 = vector.multi_reduction <maximumf>, %31, %cst_14 [1] : vector<8x16xf32> to vector<8xf32>
    %33 = vector.shape_cast %32 : vector<8xf32> to vector<8x1xf32>
    %34 = vector.broadcast %33 : vector<8x1xf32> to vector<8x16xf32>
    %35 = arith.subf %31, %34 : vector<8x16xf32>
    %36 = math.exp %35 : vector<8x16xf32>
    %cst_15 = arith.constant dense<0.000000e+00> : vector<8xf32>
    %37 = vector.multi_reduction <add>, %36, %cst_15 [1] : vector<8x16xf32> to vector<8xf32>
    %38 = vector.shape_cast %37 : vector<8xf32> to vector<8x1xf32>
    %39 = tpu.reciprocal %38 {approx = true} : vector<8x1xf32> -> vector<8x1xf32>
    %40 = vector.broadcast %39 : vector<8x1xf32> to vector<8x16xf32>
    %41 = arith.mulf %36, %40 : vector<8x16xf32>
    %42 = arith.truncf %41 : vector<8x16xf32> to vector<8x16xbf16>
    %cst_16 = arith.constant dense<0.000000e+00> : vector<8x16xf32>
    %43 = tpu.matmul %42, %30, %cst_16 {dimension_numbers = #tpu.dot_dimension_numbers<[1], [0], [0], [1], [0, 0, 1, 1], [], []>} : vector<8x16xbf16>, vector<16x16xbf16>, vector<8x16xf32> -> vector<8x16xf32>
    %44 = tpu.concatenate %26, %43 in 1 : vector<8x16xf32>, vector<8x16xf32> -> vector<8x32xf32>
    %45 = arith.truncf %44 : vector<8x32xf32> to vector<8x32xbf16>
    %c0_17 = arith.constant 0 : index
    %c0_18 = arith.constant 0 : index
    %46 = vector.load %arg7[%c0_17, %c0_18] : memref<32x32xbf16, #tpu.memory_space<vmem>>, vector<32x32xbf16>
    %cst_19 = arith.constant dense<0.000000e+00> : vector<8x32xf32>
    %47 = tpu.matmul %45, %46, %cst_19 {dimension_numbers = #tpu.dot_dimension_numbers<[1], [0], [0], [1], [0, 0, 1, 1], [], []>} : vector<8x32xbf16>, vector<32x32xbf16>, vector<8x32xf32> -> vector<8x32xf32>
    %c0_20 = arith.constant 0 : index
    %c0_21 = arith.constant 0 : index
    %48 = vector.load %arg8[%c0_20, %c0_21] : memref<1x32xf32, #tpu.memory_space<vmem>>, vector<1x32xf32>
    %49 = vector.broadcast %48 : vector<1x32xf32> to vector<8x32xf32>
    %50 = arith.addf %47, %49 : vector<8x32xf32>
    %51 = vector.shape_cast %50 : vector<8x32xf32> to vector<1x8x32xf32>
    %c0_22 = arith.constant 0 : index
    %c0_23 = arith.constant 0 : index
    %c0_24 = arith.constant 0 : index
    %52 = vector.load %arg9[%c0_22, %c0_23, %c0_24] : memref<1x8x32xf32, #tpu.memory_space<vmem>>, vector<1x8x32xf32>
    tpu.vector_store %arg9[%c0_22, %c0_23, %c0_24], %51 {strides = array<i32>} : memref<1x8x32xf32, #tpu.memory_space<vmem>>, vector<1x8x32xf32>,
    return
  }
  func.func @transform_0(%arg0: i32, %arg1: i32) -> (i32, i32, i32) {
    %c0_i32 = arith.constant 0 : i32
    %c0_i32_0 = arith.constant 0 : i32
    %c0_i32_1 = arith.constant 0 : i32
    return %arg0, %c0_i32, %c0_i32_0 : i32, i32, i32
  }
  func.func @transform_1(%arg0: i32, %arg1: i32) -> (i32, i32, i32) {
    %c0_i32 = arith.constant 0 : i32
    %c0_i32_0 = arith.constant 0 : i32
    return %arg0, %arg1, %c0_i32 : i32, i32, i32
  }
  func.func @transform_2(%arg0: i32, %arg1: i32) -> (i32, i32) {
    %c0_i32 = arith.constant 0 : i32
    %c0_i32_0 = arith.constant 0 : i32
    %c0_i32_1 = arith.constant 0 : i32
    return %c0_i32, %c0_i32_0 : i32, i32
  }
  func.func @transform_3(%arg0: i32, %arg1: i32) -> (i32, i32) {
    %c0_i32 = arith.constant 0 : i32
    %c0_i32_0 = arith.constant 0 : i32
    %c0_i32_1 = arith.constant 0 : i32
    return %c0_i32, %c0_i32_0 : i32, i32
  }
  func.func @transform_4(%arg0: i32, %arg1: i32) -> (i32, i32) {
    %c0_i32 = arith.constant 0 : i32
    %c0_i32_0 = arith.constant 0 : i32
    %c0_i32_1 = arith.constant 0 : i32
    return %c0_i32, %c0_i32_0 : i32, i32
  }
  func.func @transform_5(%arg0: i32, %arg1: i32) -> (i32, i32) {
    %c0_i32 = arith.constant 0 : i32
    %c0_i32_0 = arith.constant 0 : i32
    %c0_i32_1 = arith.constant 0 : i32
    return %c0_i32, %c0_i32_0 : i32, i32
  }
  func.func @transform_6(%arg0: i32, %arg1: i32) -> (i32, i32) {
    %c0_i32 = arith.constant 0 : i32
    %c0_i32_0 = arith.constant 0 : i32
    %c0_i32_1 = arith.constant 0 : i32
    return %c0_i32, %c0_i32_0 : i32, i32
  }
  func.func @transform_7(%arg0: i32, %arg1: i32) -> (i32, i32, i32) {
    %c0_i32 = arith.constant 0 : i32
    %c0_i32_0 = arith.constant 0 : i32
    return %arg0, %arg1, %c0_i32 : i32, i32, i32
  }
}

</mosaic_0001>

<bundles_post_ra>
// kernel: tpu_custom_call.1
= control target key start
LH: loop header
LB: loop body
LE: loop exit
PB: predicated region body
PF: predicated region fallthrough
CT: control target
= control target key end

     0   :  { %s2111_s0 = inlined_call_operand.hbm [shape: f32[2,16,32], index: 0, kind: input, shape index: {}]   ;;  %s2112_s1 = inlined_call_operand.hbm [shape: f32[2,16,32], index: 1, kind: input, shape index: {}]   ;;  %s2113_s2 = inlined_call_operand.hbm [shape: bf16[32,32], index: 2, kind: input, shape index: {}]   ;;  %s2114_s3 = inlined_call_operand.hbm [shape: bf16[32,32], index: 3, kind: input, shape index: {}]   ;;  %s2115_s4 = inlined_call_operand.hbm [shape: bf16[32,32], index: 4, kind: input, shape index: {}]   ;;  %s2116_s5 = inlined_call_operand.hbm [shape: bf16[32,32], index: 5, kind: input, shape index: {}]   ;;  %s2117_s6 = inlined_call_operand.vmem [shape: f32[1,32], index: 6, kind: input, shape index: {}]   ;;  %s2118_s7 = inlined_call_operand.hbm [shape: f32[2,16,32], index: 7, kind: output, shape index: {}]  }
   0x1   :  { %2128 = sst [smem:[#allocation29_spill]] %s2111_s0 }
   0x2   :  { %2129 = sst [smem:[#allocation30_spill]] %s2113_s2 }
   0x3   :  { %2130 = sst [smem:[#allocation31_spill]] %s2114_s3 }
   0x4   :  { %2131 = sst [smem:[#allocation32_spill]] %s2115_s4 }
   0x5   :  { %2132 = sst [smem:[#allocation33_spill]] %s2116_s5 }
   0x6   :  { %2133 = sst [smem:[#allocation34_spill]] %s2117_s6 }
   0x7   :  { %2134 = sst [smem:[#allocation35_spill]] %s2118_s7 }
   0x8   :  { %12 = vsyncpa [#allocation5], 0 }
   0x9   :  { %14 = vsyncpa [#allocation5 + $0x1], 0 }
   0xa   :  { %15 = vsyncpa [#allocation8], 0 }
   0xb   :  { %17 = vsyncpa [#allocation8 + $0x1], 0 }
   0xc   :  { %18 = vsyncpa [#allocation11], 0 }
   0xd   :  { %19 = vsyncpa [#allocation14], 0 }
   0xe   :  { %20 = vsyncpa [#allocation6], 0 }
   0xf   :  { %22 = vsyncpa [#allocation6 + $0x1], 0  ;;  %s1744_s24 = smov 0   ;;  %s1746_s25 = smov 0  }
  0x10   :  { %s1748_s26 = smov 0   ;;  %s1750_s27 = smov 0  }
  0x11   :  { %s1752_s28 = smov 0   ;;  %s1754_s29 = smov 0  }
  0x12   :  { %s1756_s30 = smov 0   ;;  %s1758_s8 = smov 0  }
  0x13   :  { %s1760_s9 = smov 0   ;;  %s1762_s10 = smov 0  }
  0x14   :  { %s1764_s11 = smov 0  }
  0x15 LB: > { %2135 = sst [smem:[#allocation22_spill]] %s1645_s24  ;;  %s1800_s12 = sadd.s32 4294967295, %s1685_s11   ;;  %s1685_s11 = sphi %s1764_s11, %s28_s11   ;;  %s1681_s10 = sphi %s1762_s10, %s2186_s10   ;;  %s1677_s9 = sphi %s1760_s9, %s2185_s9   ;;  %s1673_s8 = sphi %s1758_s8, %s2184_s8   ;;  %s1669_s30 = sphi %s1756_s30, %s2183_s30   ;;  %s1665_s29 = sphi %s1754_s29, %s2182_s29   ;;  %s1661_s28 = sphi %s1752_s28, %s2181_s28   ;;  %s1657_s27 = sphi %s1750_s27, %s2180_s27   ;;  %s1653_s26 = sphi %s1748_s26, %s2179_s26   ;;  %s1649_s25 = sphi %s1746_s25, %s2178_s25   ;;  %s1645_s24 = sphi %s1744_s24, %s2177_s24  }
  0x16   : > { %2136 = sst [smem:[#allocation23_spill]] %s1669_s30  ;;  %p1083_p0 = scmp.ge.s32.totalorder %s1685_s11, 1 }
  0x17   : > { %2137 = sst [smem:[#allocation24_spill]] %s1673_s8  ;;  %p2120_p1 = scmp.eq.s32.totalorder %s1800_s12, 0 }
  0x18   : > { %p232_p2 = scmp.lt.s32.totalorder %s1685_s11, 5  ;;  %s1687_s14 = smov [#allocation9]  }
  0x19   : > { %s244_s15 = sshll.u32 %s1687_s14, 4  ;;  %s1688_s17 = smov [#allocation10]   ;;  %s245_s15 = int_to_ptr.vmem [resolvable:$true] %s244_s15 }
  0x1a   : > { %p1805_p3 = pnand %p1083_p0, %p232_p2  ;;  %s257_s18 = sshll.u32 %s1688_s17, 4  ;;  %s258_s18 = int_to_ptr.vmem [resolvable:$true] %s257_s18 }
  0x1b   : > { %s1689_s19 = smov [#allocation12]   ;;  %s1400_s21 = scalar_lea.vmem %s245_s15, 256 }
  0x1c   : > { %p1235_p4 = pneg %p1805_p3  ;;  %s270_s20 = sshll.u32 %s1689_s19, 4  ;;  %s271_s20 = int_to_ptr.vmem [resolvable:$true] %s270_s20 }
  0x1d   : > { %p1401_p7 = scmp.ne.s32.totalorder %s245_s15, %s1400_s21  ;;  %p1408_p10 = scmp.lt.s32.totalorder %s245_s15, %s245_s15 }
  0x1e   : > { %p1813_p5 = pnand %p1235_p4, %p2120_p1  ;;  %p1409_p11 = scmp.lt.s32.totalorder %s1400_s21, %s1400_s21 }
  0x20   : > { %p1391_p6 = pneg %p1813_p5  ;;  %p1410_p12 = por %p1409_p11, %p1408_p10 }
  0x22   : > { %p1403_p8 = pnand %p1401_p7, %p1391_p6 }
  0x24   : > { %p1404_p9 = pneg %p1403_p8 }
  0x26   : > { %p1411_p13 = pnand %p1410_p12, %p1404_p9 }
  0x28   : > { %1414 = shalt.err (!%p1411_p13)
}
  0x29   : > { %s1690_s22 = smov 64   ;;  %s1691_s23 = smov 4  }
  0x2a   : > { %s2140_s2 = sld [smem:[#allocation30_spill]]  ;;  %s1426_s19 = scalar_lea.vmem %s258_s18, 256 }
  0x2b   : > { %p1427_p0 = scmp.ne.s32.totalorder %s258_s18, %s1426_s19  ;;  %p1434_p7 = scmp.lt.s32.totalorder %s258_s18, %s258_s18 }
  0x2c   : > { %p1435_p8 = scmp.lt.s32.totalorder %s1426_s19, %s1426_s19 }
  0x2d   : > { %p1429_p2 = pnand %p1427_p0, %p1391_p6 }
  0x2e   : > { %p1436_p9 = por %p1435_p8, %p1434_p7 }
  0x2f   : > { %p1430_p4 = pneg %p1429_p2 }
  0x30   : > { %1238 = dma.hbm_to_vmem [thread:$0]  (!%p1813_p5), %s2140_s2, 256, %s245_s15, [#allocation8], %s1690_s22, %s1690_s22, %s1691_s23  }
  0x31   : > { %p1437_p10 = pnand %p1436_p9, %p1430_p4 }
  0x33   : > { %1440 = shalt.err (!%p1437_p10)
}
  0x34   : > { %s2141_s3 = sld [smem:[#allocation31_spill]]  ;;  %s1452_s15 = scalar_lea.vmem %s271_s20, 256 }
  0x35   : > { %p1453_p11 = scmp.ne.s32.totalorder %s271_s20, %s1452_s15  ;;  %p1460_p0 = scmp.lt.s32.totalorder %s271_s20, %s271_s20 }
  0x36   : > { %p1461_p2 = scmp.lt.s32.totalorder %s1452_s15, %s1452_s15 }
  0x37   : > { %p1455_p12 = pnand %p1453_p11, %p1391_p6 }
  0x38   : > { %p1462_p4 = por %p1461_p2, %p1460_p0 }
  0x39   : > { %p1456_p13 = pneg %p1455_p12 }
  0x3a   : > { %1241 = dma.hbm_to_vmem [thread:$0]  (!%p1813_p5), %s2141_s3, 256, %s258_s18, [#allocation11], %s1690_s22, %s1690_s22, %s1691_s23  }
  0x3b   : > { %p1463_p7 = pnand %p1462_p4, %p1456_p13 }
  0x3d   : > { %1466 = shalt.err (!%p1463_p7)
}
  0x3e   : > { %s2142_s4 = sld [smem:[#allocation32_spill]]  ;;  %s1692_s18 = smov [#allocation13]  }
  0x3f   : > { %s283_s17 = sshll.u32 %s1692_s18, 4  ;;  %s284_s17 = int_to_ptr.vmem [resolvable:$true] %s283_s17 }
  0x40   : > { %s1478_s19 = scalar_lea.vmem %s284_s17, 256  ;;  %p1486_p11 = scmp.lt.s32.totalorder %s284_s17, %s284_s17 }
  0x41   : > { %p1479_p8 = scmp.ne.s32.totalorder %s284_s17, %s1478_s19  ;;  %p1487_p12 = scmp.lt.s32.totalorder %s1478_s19, %s1478_s19 }
  0x43   : > { %p1481_p9 = pnand %p1479_p8, %p1391_p6  ;;  %p1488_p13 = por %p1487_p12, %p1486_p11 }
  0x44   : > { %1244 = dma.hbm_to_vmem [thread:$0]  (!%p1813_p5), %s2142_s4, 256, %s271_s20, [#allocation11], %s1690_s22, %s1690_s22, %s1691_s23  }
  0x45   : > { %p1482_p10 = pneg %p1481_p9 }
  0x47   : > { %p1489_p0 = pnand %p1488_p13, %p1482_p10 }
  0x49   : > { %1492 = shalt.err (!%p1489_p0)
}
  0x4a   : > { %s2143_s5 = sld [smem:[#allocation33_spill]]  ;;  %p54_p6 = scmp.ne.s32.totalorder %s1665_s29, %s1661_s28 }
  0x4b   : > { %p55_p2 = scmp.eq.s32.totalorder %s1685_s11, 0  ;;  %p60_p4 = scmp.ne.s32.totalorder %s1661_s28, %s1657_s27 }
  0x4c   : > { %p1263_p7 = scmp.lt.s32.totalorder %s1685_s11, 4  ;;  %s300_s15 = sand.u32 1, %s1665_s29  }
  0x4d   : > { %p56_p8 = por %p55_p2, %p54_p6  ;;  %p1875_p9 = por %p2120_p1, %p60_p4 }
  0x4e   : > { %s1089_s14 = sshll.u32 %s300_s15, 4  ;;  %s1132_s18 = sshll.u32 %s1681_s10, 8 }
  0x4f   : > { %s2145_s0 = sld [smem:[#allocation29_spill]]  ;;  %s1693_s2 = smov [#allocation4]  }
  0x50   : > { %1247 = dma.hbm_to_vmem [thread:$0]  (!%p1813_p5), %s2143_s5, 256, %s284_s17, [#allocation14], %s1690_s22, %s1690_s22, %s1691_s23  }
  0x51   : > { %s304_s22 = scalar_lea.vmem [#allocation4], %s1089_s14  ;;  %p1885_p5 = pnand %p1263_p7, %p56_p8 }
  0x52   : > { %s311_s23 = sshll.u32 %s304_s22, 4  ;;  %s301_s17 = scalar_lea.sflag [#allocation5], %s300_s15  ;;  %s312_s23 = int_to_ptr.vmem [resolvable:$true] %s311_s23 }
  0x53   : > { %p1495_p10 = pneg %p1885_p5  ;;  %s1506_s16 = scalar_lea.vmem %s312_s23, 256 }
  0x54   : > { %p1507_p11 = scmp.ne.s32.totalorder %s312_s23, %s1506_s16  ;;  %s1511_s3 = sshll.u32 %s1693_s2, 4  ;;  %s1512_s3 = int_to_ptr.vmem [resolvable:$false] %s1511_s3 }
  0x55   : > { %s310_s21 = scalar_lea.hbm %s2145_s0, %s1132_s18  ;;  %s1513_s18 = scalar_lea.vmem %s1512_s3, 512 }
  0x56   : > { %p1509_p12 = pnand %p1507_p11, %p1495_p10  ;;  %p1514_p0 = scmp.lt.s32.totalorder %s312_s23, %s1512_s3 }
  0x57   : > { %p1515_p6 = scmp.lt.s32.totalorder %s1513_s18, %s1506_s16 }
  0x58   : > { %p1510_p13 = pneg %p1509_p12 }
  0x59   : > { %p1516_p4 = por %p1515_p6, %p1514_p0 }
  0x5b   : > { %p1517_p1 = pnand %p1516_p4, %p1510_p13 }
  0x5d   : > { %1520 = shalt.err (!%p1517_p1)
}
  0x5e   : > { %s1694_s14 = smov 128   ;;  %s1695_s2 = smov 8  }
  0x5f   : > { %1251 = dma.hbm_to_vmem [thread:$0]  (!%p1885_p5), %s310_s21, 256, %s312_s23, %s301_s17, %s1694_s14, %s1694_s14, %s1695_s2  }
  0x60   : > { %s1082_s3 = sadd.s32 4294967294, %s1685_s11   ;;  %s37_s16 = sadd.s32 1, %s1677_s9 }
  0x61   : > { %s40_s15 = sadd.s32 1, %s1681_s10  ;;  %p38_p1 = scmp.ge.s32.totalorder %s37_s16, 2 }
  0x62   : > { %s75_s19 = sadd.s32 1, %s1653_s26  ;;  %p82_p8 = scmp.ne.s32.totalorder %s1653_s26, %s1649_s25 }
  0x63   : > { %p88_p10 = scmp.ne.s32.totalorder %s1649_s25, %s1645_s24  ;;  %s2188_s16 = smov (%p38_p1, %s37_s16), 0 }
  0x64   : > { %2147 = sst [smem:[#allocation25_spill]] %s2188_s16  ;;  %s2190_s15 = smov (!%p38_p1, %s40_s15), %s1681_s10 }
  0x65   : > { %s71_s20 = ssub.s32 %s1677_s9, %s2188_s16  ;;  %p1908_p5 = por %p82_p8, %p55_p2 }
  0x66   : > { %p42_p11 = scmp.ge.s32.totalorder %s2190_s15, 2  ;;  %p2149_p12 = scmp.eq.s32.totalorder %s1800_s12, 0 }
  0x67   : > { %p219_p0 = scmp.eq.s32.totalorder %s1800_s12, 3  ;;  %p225_p6 = scmp.eq.s32.totalorder %s1082_s3, 3 }
  0x68   : > { %p1914_p13 = por %p88_p10, %p2149_p12  ;;  %s2192_s15 = smov (%p42_p11, %s2190_s15), 0 }
  0x69   : > { %2151 = sst [smem:[#allocation26_spill]] %s2192_s15  ;;  %p1921_p4 = por %p219_p0, %p82_p8 }
  0x6a   : > { %p1925_p2 = por %p225_p6, %p88_p10  ;;  %s44_s17 = ssub.s32 %s1681_s10, %s2192_s15 }
  0x6b   : > { %s2152_s23 = scalar_select %p1921_p4, 1, 0 }
  0x6c   : > { %s2154_s27 = scalar_select %p1925_p2, 1, 0 }
  0x6d   : > { %2153 = sst [smem:[#allocation27_spill]] %s2152_s23  ;;  %s321_s18 = sand.u32 1, %s1685_s11  }
  0x6e   : > { %2155 = sst [smem:[#allocation28_spill]] %s2154_s27  ;;  %p45_p1 = scmp.eq.s32.totalorder %s44_s17, 0 }
  0x6f   : > { %s72_s14 = sor.u32 %s71_s20, %s44_s17  ;;  %s2156_s2 = sadd.s32 1, %s1665_s29 }
  0x70   : > { %p73_p12 = scmp.eq.s32.totalorder %s72_s14, 0  ;;  %s323_s4 = sand.u32 1, %s1653_s26  }
  0x71   : > { %s1935_s3 = scalar_select %p45_p1, %s1665_s29, %s2156_s2  }
  0x72   : > { %s1938_s0 = scalar_select %p73_p12, %s1653_s26, %s75_s19  }
  0x73   : > { %s1093_s5 = sshll.u32 %s1681_s10, 1  ;;  %s1092_s16 = sshll.u32 %s323_s4, 3 }
  0x74   : > { %s330_s24 = sadd.s32 %s1677_s9, %s1093_s5  ;;  %s325_s27 = scalar_lea.vmem [#allocation7], %s1092_s16 }
  0x75   : > { %s1094_s6 = sshll.u32 %s330_s24, 7  ;;  %s334_s30 = sshll.u32 %s325_s27, 4  ;;  %s335_s30 = int_to_ptr.vmem [resolvable:$true] %s334_s30 }
  0x76   : > { %s332_s15 = scalar_lea.hbm %s2112_s1, %s1094_s6  ;;  %p1950_p8 = pnand %p1263_p7, %p1908_p5 }
  0x77   : > { %s322_s19 = scalar_lea.sflag [#allocation8], %s321_s18  ;;  %s1534_s4 = scalar_lea.vmem %s335_s30, 128 }
  0x78   : > { %p1523_p10 = pneg %p1950_p8  ;;  %p1535_p11 = scmp.ne.s32.totalorder %s335_s30, %s1534_s4 }
  0x79   : > { %s1696_s5 = smov [#allocation7]  }
  0x7a   : > { %p1537_p0 = pnand %p1535_p11, %p1523_p10  ;;  %s1539_s24 = sshll.u32 %s1696_s5, 4  ;;  %s1540_s24 = int_to_ptr.vmem [resolvable:$false] %s1539_s24 }
  0x7b   : > { %s1541_s6 = scalar_lea.vmem %s1540_s24, 256  ;;  %p1542_p1 = scmp.lt.s32.totalorder %s335_s30, %s1540_s24 }
  0x7c   : > { %p1538_p6 = pneg %p1537_p0  ;;  %p1543_p12 = scmp.lt.s32.totalorder %s1541_s6, %s1534_s4 }
  0x7e   : > { %p1544_p2 = por %p1543_p12, %p1542_p1 }
  0x80   : > { %p1545_p4 = pnand %p1544_p2, %p1538_p6 }
  0x82   : > { %1548 = shalt.err (!%p1545_p4)
}
  0x83   : > { %1254 = dma.hbm_to_vmem [thread:$0]  (!%p1950_p8), %s332_s15, 128, %s335_s30, %s322_s19  }
  0x84   : > { %343 = sbr.rel (%p1805_p3) target bundleno = 1720 (0x6b8), region = 48  ;;  %s345_s8 = sand.u32 (!%p1805_p3), 1, %s1661_s28  }
  0x85   : > { %s1961_s16 = sshll.u32 (!%p1805_p3), %s345_s8, 4  ;;  %s346_s21 = scalar_lea.sflag (!%p1805_p3), [#allocation5], %s345_s8 }
  0x86   : > { %s349_s23 = scalar_lea.vmem (!%p1805_p3), [#allocation4], %s1961_s16 }
  0x89   : > { %1620 = dma.done.wait (%p1875_p9), %s346_s21, 256  }
  0x8a   : > { %1622 = vsyncadd (%p1875_p9), %s346_s21, 4294967040  ;;  %s354_s30 = sand.u32 1, %s1800_s12   ;;  %s356_s13 = sand.u32 1, %s1649_s25  }
  0x8b   : > { %s1972_s15 = sshll.u32 %s356_s13, 3  ;;  %s355_s27 = scalar_lea.sflag [#allocation8], %s354_s30 }
  0x8c   : > { %s358_s17 = scalar_lea.vmem [#allocation7], %s1972_s15 }
  0x8d   : > { %1624 = dma.done.wait (%p1914_p13), %s355_s27, 128  }
  0x8e   : > { %1626 = vsyncadd (%p1914_p13), %s355_s27, 4294967168  ;;  %p2158_p3 = scmp.eq.s32.totalorder %s1800_s12, 0 }
  0x90   : > { %1628 = dma.done.wait (%p2158_p3), [#allocation8], 256   ;;  %p2159_p7 = pmov %p2158_p3 }
  0x91   : > { %p2160_p9 = pmov %p2158_p3 }
  0x92   : > { %1630 = vsyncadd (%p2159_p7), [#allocation8], 4294967040 }
  0x93   : > { %1632 = dma.done.wait (%p2160_p9), [#allocation11], 512   ;;  %p2161_p5 = pmov %p2158_p3 }
  0x94   : > { %p2162_p4 = pmov %p2158_p3 }
  0x95   : > { %1634 = vsyncadd (%p2161_p5), [#allocation11], 4294966784 }
  0x96   : > { %1636 = dma.done.wait (%p2162_p4), [#allocation14], 256   ;;  %p2163_p2 = pmov %p2158_p3 }
  0x97   : > { %s409_s7 = scalar_lea.vmem [#allocation15], %s1972_s15  ;;  %s2164_s22 = sld [smem:[#allocation23_spill]] }
  0x98   : > { %1638 = vsyncadd (%p2163_p2), [#allocation14], 4294967040 }
  0x9d   : > { %p1103_p13 = scmp.ne.s32.totalorder %s2164_s22, 0 }
  0x9f   : > { %414 = sbr.rel (%p1103_p13) target bundleno = 374 (0x176), region = 76 }
  0xa4   : > { %v1371_v0 = vld [vmem:[#allocation10 + $0x8] sm:$0xff]   ;;  %v1697_v1 = vmov 0.0   ;;  %v1372_v2 = vld [vmem:[#allocation12 + $0x8] sm:$0xff]   ;;  %v1373_v3 = vld [vmem:[#allocation10] sm:$0xff]   ;;  %vm1698_vm0 = vmmov 0   ;;  %vm434_vm1 = vcmask 261120  }
  0xa5   : > { %1157 = vmatprep.subr.bf16.mxu0 %v1697_v1  ;;  %1165 = vmatprep.subr.bf16.mxu1 %v1697_v1  ;;  %v1374_v4 = vld [vmem:[#allocation12] sm:$0xff]   ;;  %v416_v6 = vld [vmem:[%s349_s23 + $0x8] sm:$0xff]  ;;  %vm487_vm2 = vcmask 257024  }
  0xa6   : > { %1158 = vmatpush3.bf16.msra.mxu0 %v1371_v0  ;;  %1161 = vmatprep.mubr.msk.bf16.mxu0 %vm1698_vm0, %v1697_v1  ;;  %v415_v5 = vld [vmem:[%s349_s23] sm:$0xff] }
  0xa7   : > { %1166 = vmatpush3.bf16.msra.mxu1 %v1372_v2  ;;  %1159 = vmatprep.subr.bf16.mxu0 %v1697_v1  ;;  %v417_v7 = vpack.c.bf16 %v416_v6, %v415_v5 }
  0xa8   : > { %1167 = vmatprep.subr.bf16.mxu1 %v1697_v1  ;;  %1169 = vmatprep.mubr.msk.bf16.mxu1 %vm1698_vm0, %v1697_v1 }
  0xaa   : > { %1160 = vmatpush3.bf16.msra.mxu0 %v1373_v3 }
  0xab   : > { %1168 = vmatpush3.bf16.msra.mxu1 %v1374_v4 }
  0xad   : > { %1162 = vmatmul.mubr.msk.bf16.vlgmr.msra.gmra.mxu0 %vm434_vm1, %v417_v7 }
  0xae   : > { %1170 = vmatmul.mubr.msk.bf16.vlgmr.msra.gmra.mxu1 %vm434_vm1, %v417_v7 }
 0x16d   : > { %v472_v8 = vpop.f32.mrf.mxu0 }
 0x16e   : > { %v1133_v9 = vpack.c.bf16 %v472_v8, %v472_v8  ;;  %v540_v10 = vpop.f32.mrf.mxu1 }
 0x16f   : > { %v1135_v11 = vpack.c.bf16 %v540_v10, %v540_v10  ;;  %v1163_v12 = vpop.f32.mrf.mxu0 }
 0x170   : > { %488 = vst.msk [vmem:[#allocation2] sm:$0xf] %vm487_vm2, %v1133_v9  ;;  %v1171_v13 = vpop.f32.mrf.mxu1 }
 0x171   : > { %555 = vst.msk [vmem:[#allocation3] sm:$0xf] %vm487_vm2, %v1135_v11  ;;  %v475_v14 = vpop.f32.mrf.mxu0 }
 0x172   : > { %v1134_v15 = vpack.c.bf16 %v475_v14, %v475_v14  ;;  %v543_v16 = vpop.f32.mrf.mxu1 }
 0x173   : > { %v1136_v17 = vpack.c.bf16 %v543_v16, %v543_v16  ;;  %v1164_v18 = vpop.f32.mrf.mxu0 }
 0x174   : > { %489 = vst.msk [vmem:[#allocation2 + $0x4] sm:$0xf] %vm487_vm2, %v1134_v15  ;;  %v1172_v19 = vpop.f32.mrf.mxu1 }
 0x175   : > { %556 = vst.msk [vmem:[#allocation3 + $0x4] sm:$0xf] %vm487_vm2, %v1136_v17 }
 0x176 PF: > { %v1375_v20 = vld [vmem:[#allocation9 + $0x8] sm:$0xff]   ;;  %v1699_v21 = vmov 0.0   ;;  %v1376_v22 = vld [vmem:[#allocation9] sm:$0xff]   ;;  %vm1700_vm3 = vmmov 0   ;;  %v557_v23 = vld [vmem:[%s358_s17] sm:$0xff]  ;;  %vm629_vm4 = vcmask 130048  }
 0x177   : > { %1173 = vmatprep.subr.bf16.mxu0 %v1699_v21  ;;  %1181 = vmatprep.subr.bf16.mxu1 %v1699_v21  ;;  %v558_v25 = vpack.c.bf16 %v557_v23, %v557_v23  ;;  %s1701_s12 = smov 112   ;;  %vm575_vm5 = vcmask 261120   ;;  %v1379_v1 = vld [vmem:[#allocation13 + $0x8] sm:$0xff]   ;;  %v1380_v2 = vld [vmem:[#allocation13] sm:$0xff]   ;;  %s2165_s18 = sld [smem:[#allocation24_spill]] }
 0x178   : > { %1174 = vmatpush3.bf16.msra.mxu0 %v1375_v20  ;;  %1177 = vmatprep.mubr.msk.bf16.mxu0 %vm1700_vm3, %v1699_v21  ;;  %s2166_s14 = sld [smem:[#allocation23_spill]]  ;;  %s1702_s2 = smov 16  }
 0x179   : > { %1175 = vmatprep.subr.bf16.mxu0 %v1699_v21  ;;  %1183 = vmatprep.mubr.msk.bf16.mxu1 %vm1700_vm3, %v1699_v21  ;;  %s2167_s20 = sld [smem:[#allocation27_spill]]  ;;  %s935_s16 = sshll.u32 %s409_s7, 4  ;;  %s2047_s16 = int_to_ptr.vmem [resolvable:$true] %s935_s16 }
 0x17a   : > { %s2168_s6 = sld [smem:[#allocation34_spill]]  ;;  %s920_s22 = scalar_lea.sflag [#allocation6], %s356_s13 }
 0x17b   : > { %v1377_v24 = vld [vmem:[#allocation2] sm:$0xff]   ;;  %s2169_s30 = sld [smem:[#allocation35_spill]] }
 0x17c   : > { %740 = vrot.lane.b32.xlu0 %v1377_v24, %s1701_s12  ;;  %v634_v26 = vsel %vm629_vm4, %v1377_v24, 0  ;;  %1176 = vmatpush3.bf16.msra.mxu0 %v1376_v22  ;;  %v1378_v50 = vld [vmem:[#allocation3] sm:$0xff]  }
 0x17d   : > { %1182 = vmatpush3.bf16.xpose.msra.mxu1 %v634_v26  ;;  %1187 = vmatprep.subr.bf16.mxu0 %v1699_v21  ;;  %s1128_s19 = sshll.u32 %s2165_s18, 1  ;;  %s1703_s18 = smov [#allocation15]  }
 0x17e   : > { %1193 = vmatprep.subr.bf16.mxu1 %v1699_v21  ;;  %s931_s4 = sadd.s32 %s2166_s14, %s1128_s19  ;;  %s1553_s14 = sshll.u32 %s1703_s18, 4  ;;  %s1554_s14 = int_to_ptr.vmem [resolvable:$false] %s1553_s14 }
 0x17f   : > { %1178 = vmatmul.mubr.msk.bf16.vlgmr.msra.gmra.mxu0 %vm575_vm5, %v558_v25  ;;  %s1129_s8 = sshll.u32 %s931_s4, 7  ;;  %p2171_p10 = scmp.ne.s32.totalorder %s2167_s20, 0 }
 0x180   : > { %1189 = vmatprep.mubr.msk.bf16.mxu0 %vm1700_vm3, %v1699_v21  ;;  %1188 = vmatpush3.bf16.msra.mxu0 %v1378_v50  ;;  %v1123_v14 = vld [vmem:[%s2168_s6] ss:$0 sm:$0xff]  ;;  %p1556_p6 = scmp.lt.s32.totalorder %s2047_s16, %s1554_s14 }
 0x181   : > { %1199 = vmatprep.subr.bf16.mxu0 %v1699_v21  ;;  %s2170_s17 = smov %s2169_s30  ;;  %s2045_s27 = scalar_lea.hbm %s2169_s30, %s1129_s8 }
 0x1ee   : > { %v741_v27 = vpop.permute.xlu0 %740 }
 0x1ef   : > { %v746_v30 = vsel %vm629_vm4, %v741_v27, 0 }
 0x23f   : > { %v613_v28 = vpop.f32.mrf.mxu0 }
 0x240   : > { %v623_v29 = vpack.c.bf16 %v613_v28, %v613_v28 }
 0x241   : > { %v1179_v31 = vpop.f32.mrf.mxu0 }
 0x242   : > { %738 = vrot.lane.b32.xlu0 %v623_v29, %s1701_s12  ;;  %1184 = vmatmul.mubr.msk.bf16.vlgmr.msra.gmra.mxu1 %vm629_vm4, %v623_v29 }
 0x243   : > { %v616_v32 = vpop.f32.mrf.mxu0  ;;  %1194 = vmatpush3.bf16.xpose.msra.mxu1 %v746_v30  ;;  %1195 = vmatprep.mubr.msk.bf16.mxu1 %vm1700_vm3, %v1699_v21 }
 0x244   : > { %1205 = vmatprep.subr.bf16.mxu1 %v1699_v21 }
 0x245   : > { %v1180_v33 = vpop.f32.mrf.mxu0 }
 0x2b4   : > { %v739_v34 = vpop.permute.xlu0 %738 }
 0x2b5   : > { %1196 = vmatmul.mubr.msk.bf16.vlgmr.msra.gmra.mxu1 %vm629_vm4, %v739_v34 }
 0x2b6   : > { %1209 = vmatprep.mubr.msk.bf16.mxu1 %vm1700_vm3, %v1699_v21  ;;  %1206 = vmatpush3.bf16.msra.mxu1 %v1379_v1 }
 0x2b7   : > { %1207 = vmatprep.subr.bf16.mxu1 %v1699_v21 }
 0x2ba   : > { %1208 = vmatpush3.bf16.msra.mxu1 %v1380_v2 }
 0x302   : > { %v670_v35 = vpop.f32.mrf.mxu1 }
 0x303   : > { %v676_v36 = vsel %vm629_vm4, %v670_v35, -inf }
 0x304   : > { %677 = vmax.xlane.f32.xlu1 %v676_v36  ;;  %v1185_v37 = vpop.f32.mrf.mxu1 }
 0x306   : > { %v673_v38 = vpop.f32.mrf.mxu1 }
 0x308   : > { %v1186_v39 = vpop.f32.mrf.mxu1 }
 0x375   : > { %v782_v40 = vpop.f32.mrf.mxu1 }
 0x376   : > { %v788_v41 = vsel %vm629_vm4, %v782_v40, -inf }
 0x377   : > { %789 = vmax.xlane.f32.xlu1 %v788_v41  ;;  %v1197_v42 = vpop.f32.mrf.mxu1 }
 0x379   : > { %v785_v43 = vpop.f32.mrf.mxu1 }
 0x37b   : > { %v1198_v44 = vpop.f32.mrf.mxu1 }
 0x38d   : > { %v678_v45 = vpop.xlane.xlu1 %677 }
 0x38e   : > { %v679_v46 = vsub.f32 %v670_v35, %v678_v45 }
 0x390   : > { %v680_v47 = vmul.f32 1.442695, %v679_v46 }
 0x392   : > { %1381 = vpow2.f32 %v680_v47 }
 0x39f   : > { %v1382_v48 = vpop.eup %1381 }
 0x3a0   : > { %v682_v49 = vsel %vm629_vm4, %v1382_v48, 0.0 }
 0x3a1   : > { %683 = vadd.xlane.f32.xlu0 %v682_v49 }
 0x400   : > { %v790_v51 = vpop.xlane.xlu1 %789 }
 0x401   : > { %v791_v52 = vsub.f32 %v782_v40, %v790_v51 }
 0x403   : > { %v792_v53 = vmul.f32 1.442695, %v791_v52 }
 0x405   : > { %1383 = vpow2.f32 %v792_v53 }
 0x412   : > { %v1384_v54 = vpop.eup %1383 }
 0x413   : > { %v794_v55 = vsel %vm629_vm4, %v1384_v54, 0.0 }
 0x414   : > { %795 = vadd.xlane.f32.xlu1 %v794_v55 }
 0x425   : > { %800 = vrot.lane.b32.xlu1 %v1378_v50, %s1701_s12  ;;  %s1549_s12 = scalar_lea.vmem %s2047_s16, 128 }
 0x426   : > { %p1550_p8 = scmp.ne.s32.totalorder %s2047_s16, %s1549_s12 }
 0x428   : > { %p1551_p11 = pnand %p1550_p8, %p2171_p10 }
 0x42a   : > { %v684_v56 = vpop.xlane.xlu0 %683  ;;  %p1552_p0 = pneg %p1551_p11 }
 0x42b   : > { %1385 = vrcp.f32 %v684_v56 }
 0x438   : > { %v1386_v57 = vpop.eup %1385 }
 0x439   : > { %v686_v58 = vmul.f32 %v1386_v57, %v1382_v48 }
 0x43b   : > { %v687_v59 = vpack.c.bf16 %v686_v58, %v686_v58 }
 0x43d   : > { %1190 = vmatmul.mubr.msk.bf16.vlgmr.msra.gmra.mxu0 %vm629_vm4, %v687_v59 }
 0x43e   : > { %1201 = vmatprep.mubr.msk.bf16.mxu0 %vm1700_vm3, %v1699_v21 }
 0x49d   : > { %v796_v60 = vpop.xlane.xlu1 %795 }
 0x49e   : > { %1387 = vrcp.f32 %v796_v60 }
 0x4a1   : > { %v801_v61 = vpop.permute.xlu1 %800 }
 0x4a2   : > { %1200 = vmatpush3.bf16.msra.mxu0 %v801_v61 }
 0x4ab   : > { %v1388_v62 = vpop.eup %1387 }
 0x4ac   : > { %v798_v63 = vmul.f32 %v1388_v62, %v1384_v54 }
 0x4ae   : > { %v799_v0 = vpack.c.bf16 %v798_v63, %v798_v63 }
 0x4b0   : > { %1202 = vmatmul.mubr.msk.bf16.vlgmr.msra.gmra.mxu0 %vm629_vm4, %v799_v0 }
 0x4fd   : > { %v731_v3 = vpop.f32.mrf.mxu0 }
 0x4ff   : > { %v1191_v4 = vpop.f32.mrf.mxu0 }
 0x501   : > { %v734_v5 = vpop.f32.mrf.mxu0 }
 0x503   : > { %v1192_v6 = vpop.f32.mrf.mxu0 }
 0x570   : > { %v840_v7 = vpop.f32.mrf.mxu0 }
 0x571   : > { %847 = vrot.lane.b32.xlu1 %v840_v7, %s1702_s2  ;;  %s1555_s2 = scalar_lea.vmem %s1554_s14, 256 }
 0x572   : > { %v1203_v8 = vpop.f32.mrf.mxu0  ;;  %p1557_p1 = scmp.lt.s32.totalorder %s1555_s2, %s1549_s12 }
 0x574   : > { %v843_v9 = vpop.f32.mrf.mxu0  ;;  %p1558_p12 = por %p1557_p1, %p1556_p6 }
 0x576   : > { %v1204_v10 = vpop.f32.mrf.mxu0  ;;  %p1559_p3 = pnand %p1558_p12, %p1552_p0 }
 0x5e3   : > { %v848_v11 = vpop.permute.xlu1 %847 }
 0x5e4   : > { %v850_v12 = vsel %vm629_vm4, %v731_v3, %v848_v11 }
 0x5e5   : > { %v851_v13 = vpack.c.bf16 %v850_v12, %v850_v12 }
 0x5e7   : > { %1210 = vmatmul.mubr.msk.bf16.vlgmr.msra.gmra.mxu1 %vm575_vm5, %v851_v13 }
 0x6a7   : > { %v912_v15 = vpop.f32.mrf.mxu1 }
 0x6a8   : > { %v913_v16 = vadd.f32 %v1123_v14, %v912_v15 }
 0x6a9   : > { %v1211_v17 = vpop.f32.mrf.mxu1 }
 0x6aa   : > { %918 = vst.msk [vmem:[%s409_s7] sm:$0xff] %vm575_vm5, %v913_v16 }
 0x6ab   : > { %v915_v18 = vpop.f32.mrf.mxu1 }
 0x6ac   : > { %1562 = shalt.err (!%p1559_p3)
}
 0x6ad   : > { %s1563_s15 = scalar_lea.hbm %s2045_s27, 128  ;;  %s1567_s19 = scalar_lea.hbm %s2170_s17, 512 }
 0x6ae   : > { %p1564_p7 = scmp.ne.s32.totalorder %s2045_s27, %s1563_s15  ;;  %p1568_p4 = scmp.lt.s32.totalorder %s2045_s27, %s2170_s17 }
 0x6af   : > { %p1569_p2 = scmp.lt.s32.totalorder %s1567_s19, %s1563_s15 }
 0x6b0   : > { %p1565_p9 = pnand %p1564_p7, %p2171_p10 }
 0x6b1   : > { %p1570_p13 = por %p1569_p2, %p1568_p4 }
 0x6b2   : > { %p1566_p5 = pneg %p1565_p9 }
 0x6b4   : > { %p1571_p8 = pnand %p1570_p13, %p1566_p5 }
 0x6b6   : > { %1574 = shalt.err (!%p1571_p8)
}
 0x6b7   : > { %1233 = dma.vmem_to_hbm [thread:$0]  (%p2171_p10), %s2047_s16, 128, %s2045_s27, %s920_s22   ;;  %v1212_v19 = vpop.f32.mrf.mxu1 }
 0x6b8 PF: > { %s2172_s24 = sld [smem:[#allocation22_spill]]  ;;  %p1268_p11 = scmp.ge.s32.totalorder %s1685_s11, 2 }
 0x6b9   : > { %s2173_s6 = sld [smem:[#allocation28_spill]] }
 0x6be   : > { %s947_s8 = sand.u32 1, %s2172_s24  }
 0x6bf   : > { %p2174_p0 = scmp.ne.s32.totalorder %s2173_s6, 0  ;;  %s948_s21 = scalar_lea.sflag [#allocation6], %s947_s8 }
 0x6c1   : > { %p1256_p6 = pnand %p1268_p11, %p2174_p0 }
 0x6c3   : > { %p1257_p1 = pneg %p1256_p6 }
 0x6c5   : > { %1640 = dma.done.wait (%p1257_p1), %s948_s21, 128  }
 0x6c6   : > { %1642 = vsyncadd (%p1257_p1), %s948_s21, 4294967168  ;;  %s28_s11 = sadd.s32 1, %s1685_s11   ;;  %s2175_s20 = sld [smem:[#allocation25_spill]] }
 0x6c7   : > { %p25_p12 = scmp.ge.s32.totalorder %s28_s11, 6   ;;  %s2176_s16 = sld [smem:[#allocation26_spill]] }
 0x6c8   : > { %s2177_s24 = smov %s1649_s25  ;;  %s2178_s25 = smov %s1653_s26 }
 0x6c9   : > { %s2179_s26 = smov %s1938_s0  ;;  %s2180_s27 = smov %s1661_s28 }
 0x6ca   : > { %s2181_s28 = smov %s1665_s29  ;;  %s2182_s29 = smov %s1935_s3 }
 0x6cb   : > { %s2183_s30 = smov %s1677_s9  ;;  %s2184_s8 = smov %s1681_s10 }
 0x6cc   : > { %s2185_s9 = smov %s2175_s20  ;;  %27 = sbr.rel (!%p25_p12) target bundleno = 21 (0x15), region = 126 }
 0x6cd   : > { %s2186_s10 = smov %s2176_s16 }
 0x6d1   :  { %953 = vsyncpa [#allocation5], 1 }
 0x6d2   :  { %955 = vsyncpa [#allocation5 + $0x1], 1 }
 0x6d3   :  { %956 = vsyncpa [#allocation8], 1 }
 0x6d4   :  { %958 = vsyncpa [#allocation8 + $0x1], 1 }
 0x6d5   :  { %959 = vsyncpa [#allocation11], 1 }
 0x6d6   :  { %960 = vsyncpa [#allocation14], 1 }
 0x6d7   :  { %961 = vsyncpa [#allocation6], 1 }
 0x6d8   :  { %963 = vsyncpa [#allocation6 + $0x1], 1 }

</bundles_post_ra>
